<compile_context>
chip_gen: v7x
topology: tpu7x:2x2x1
jax: 0.10.0
libtpu: 0.0.40
codegen_flags: <defaults>
</compile_context>

<pallas_src>
import numpy as np
import jax
import jax.numpy as jnp
from jax import lax
from jax.experimental import pallas as pl
from jax.experimental.pallas import tpu as pltpu


# ---------------------------------------------------------------------------
# Tuning constants
# ---------------------------------------------------------------------------
_TARGET_BLOCK_BYTES = 8 << 20    # DMA path: dense output block target
_MAX_BLOCK_ROWS = 1024           # DMA path: bounds the per-step issue loop
_MAX_ROW_BYTES = 1 << 20         # split rows larger than this (v7x VMEM headroom)
_MIN_SUBROW_BYTES = 64 << 10     # don't split rows below this (keep DMAs fat)
_NSEM = 16                       # DMA path: in-flight row-DMA ring depth
_MXU_OUT_BLOCK_BYTES = 2 << 20   # MXU path: output block target
_MXU_MAX_BLOCK_ROWS = 512
_MXU_DATA_CHUNK_BYTES = 2 << 20  # MXU path: data chunk streamed per inner step
_DESC_EQUIV_BYTES = 64 << 10     # ~per-row-DMA fixed cost expressed as HBM bytes


def _cdiv(a: int, b: int) -> int:
    return -(-a // b)


def _mxu_row_bytes_threshold() -> int:
    # Per-row DMAs stop being descriptor/latency bound once a row moves roughly
    # (per-descriptor cost) * (HBM BW) bytes; v7x HBM (~3.2 TB/s) is ~4x v5e, so
    # the switch-over row size is correspondingly larger there.
    try:
        kind = jax.devices()[0].device_kind.lower()
    except Exception:  # pragma: no cover - defensive
        kind = ""
    return 4096 if ("v7" in kind or "tpu7" in kind) else 1024


def _pick_block_rows(m: int, row_bytes: int, target_bytes: int, max_rows: int) -> int:
    """Rows per output block: target a dense multi-MiB block, sublane aligned."""
    br = int(target_bytes // max(row_bytes, 1))
    br = max(8, min(br, max_rows))
    br = (br // 8) * 8
    if m > 8:
        # Keep >= 2 grid steps so both v7x TensorCores get work ("parallel" axis).
        br = min(br, _cdiv(_cdiv(m, 2), 8) * 8)
    if br >= m:
        br = m  # full-dim block: exact, no padding / write clipping needed
    return br


def _split_tail(tail: int, itemsize: int) -> int:
    """Smallest divisor s of tail so sub-rows are <= _MAX_ROW_BYTES (wrapper-side
    'tail chunking'); returns 1 if splitting is unnecessary or unprofitable."""
    row_bytes = tail * itemsize
    if row_bytes <= _MAX_ROW_BYTES:
        return 1
    need = _cdiv(row_bytes, _MAX_ROW_BYTES)
    for s in range(need, tail + 1):
        if tail % s == 0:
            if (tail // s) * itemsize >= _MIN_SUBROW_BYTES:
                return s
            break
    return 1  # TODO(synk): awkward huge tails fall through (see header TODO)


# ---------------------------------------------------------------------------
# Path 1: per-row gather DMAs (large rows, any dtype)
# ---------------------------------------------------------------------------
def _make_dma_gather_kernel(block_rows: int, nsem: int):
    """Fetch this block's flat indices HBM->SMEM, then gather one row per DMA
    straight from HBM into the pipelined VMEM output block, keeping up to
    `nsem` copies in flight via a rolling semaphore ring."""

    def kernel(idx_hbm, d_hbm, o_ref, idx_smem, sems):
        base = pl.multiple_of(pl.program_id(0) * block_rows, block_rows)
        icp = pltpu.make_async_copy(
            idx_hbm.at[pl.ds(base, block_rows)], idx_smem, sems.at[nsem])
        icp.start()
        icp.wait()

        unroll = min(8, block_rows)

        def issue(r, carry):
            slot = r % nsem

            @pl.when(r >= nsem)  # recycle slot: wait for the copy issued at r-nsem
            def _():
                pltpu.make_async_copy(
                    d_hbm.at[0], o_ref.at[r - nsem], sems.at[slot]).wait()

            pltpu.make_async_copy(
                d_hbm.at[idx_smem[r]], o_ref.at[r], sems.at[slot]).start()
            return carry

        lax.fori_loop(0, block_rows, issue, 0, unroll=unroll)

        def drain(r, carry):
            pltpu.make_async_copy(
                d_hbm.at[0], o_ref.at[r], sems.at[r % nsem]).wait()
            return carry

        lax.fori_loop(max(block_rows - nsem, 0), block_rows, drain, 0,
                      unroll=unroll)

    return kernel


def _gather_rows_dma(data2d: jax.Array, flat_idx: jax.Array, m: int,
                     block_rows: int) -> jax.Array:
    rows, tail = data2d.shape
    itemsize = np.dtype(data2d.dtype).itemsize
    m_pad = _cdiv(m, block_rows) * block_rows
    if m_pad != m:  # pad only the (cheap) index array; extra output rows are clipped
        flat_idx = jnp.concatenate(
            [flat_idx, jnp.zeros((m_pad - m,), jnp.int32)])

    block_bytes = block_rows * tail * itemsize
    vmem_limit = int(min(max(2 * block_bytes + (2 << 20), 24 << 20), 96 << 20))

    return pl.pallas_call(
        _make_dma_gather_kernel(block_rows, _NSEM),
        out_shape=jax.ShapeDtypeStruct((m, tail), data2d.dtype),
        grid=(m_pad // block_rows,),
        in_specs=[pl.BlockSpec(memory_space=pl.ANY),   # flat row indices (HBM)
                  pl.BlockSpec(memory_space=pl.ANY)],  # data table (HBM)
        out_specs=pl.BlockSpec((block_rows, tail), lambda i: (i, 0)),
        scratch_shapes=[pltpu.SMEM((block_rows,), jnp.int32),
                        pltpu.SemaphoreType.DMA((_NSEM + 1,))],
        compiler_params=pltpu.CompilerParams(
            dimension_semantics=("parallel",),
            vmem_limit_bytes=vmem_limit),
        cost_estimate=pl.CostEstimate(
            flops=0, transcendentals=0,
            bytes_accessed=2 * m * tail * itemsize),
    )(flat_idx.astype(jnp.int32), data2d)


# ---------------------------------------------------------------------------
# Path 2: one-hot MXU gather (tiny float rows: descriptor-bound regime)
# ---------------------------------------------------------------------------
def _make_mxu_gather_kernel(rows_total: int):
    """out[i,:] = sum_r (idx[i]==r) * data[r,:], accumulated over data chunks.
    Exact (one-hot selection); streams the data table at HBM line rate."""

    def kernel(idx_ref, d_ref, o_ref, acc_ref):
        c = pl.program_id(1)

        @pl.when(c == 0)
        def _():
            acc_ref[...] = jnp.zeros_like(acc_ref)

        rc = d_ref.shape[0]
        base = c * rc
        # Mask OOB/garbage rows of a partial last chunk (0 * NaN protection).
        row_col = base + lax.broadcasted_iota(jnp.int32, (rc, 1), 0)
        data = jnp.where(row_col < rows_total, d_ref[...], 0)
        row_row = base + lax.broadcasted_iota(jnp.int32, (1, rc), 1)
        onehot = (idx_ref[...] == row_row).astype(d_ref.dtype)
        acc_ref[...] += jnp.dot(onehot, data,
                                preferred_element_type=jnp.float32)

        @pl.when(c == pl.num_programs(1) - 1)
        def _():
            o_ref[...] = acc_ref[...].astype(o_ref.dtype)

    return kernel


def _gather_rows_mxu(data2d: jax.Array, flat_idx: jax.Array, m: int,
                     block_rows: int) -> jax.Array:
    rows, tail = data2d.shape
    itemsize = np.dtype(data2d.dtype).itemsize
    m_pad = _cdiv(m, block_rows) * block_rows
    if m_pad != m:
        flat_idx = jnp.concatenate(
            [flat_idx, jnp.zeros((m_pad - m,), jnp.int32)])
    idx2d = flat_idx.astype(jnp.int32).reshape(m_pad, 1)

    # Data chunk rows: a few MiB per chunk, keep the one-hot intermediate modest.
    rc = max(8, ((_MXU_DATA_CHUNK_BYTES // max(tail * itemsize, 1)) // 8) * 8)
    rc = min(rc, max(8, (((2 << 20) // max(block_rows * 4, 1)) // 8) * 8))
    if rc >= rows:
        rc = rows  # single chunk, full-dim block
    n_chunks = _cdiv(rows, rc)

    out_block = block_rows * tail * itemsize
    need = (2 * rc * tail * itemsize + 2 * out_block
            + block_rows * tail * 4 + (2 << 20))
    vmem_limit = int(min(max(need, 24 << 20), 64 << 20))

    return pl.pallas_call(
        _make_mxu_gather_kernel(rows),
        out_shape=jax.ShapeDtypeStruct((m, tail), data2d.dtype),
        grid=(m_pad // block_rows, n_chunks),
        in_specs=[pl.BlockSpec((block_rows, 1), lambda i, c: (i, 0)),
                  pl.BlockSpec((rc, tail), lambda i, c: (c, 0))],
        out_specs=pl.BlockSpec((block_rows, tail), lambda i, c: (i, 0)),
        scratch_shapes=[pltpu.VMEM((block_rows, tail), jnp.float32)],
        compiler_params=pltpu.CompilerParams(
            dimension_semantics=("parallel", "arbitrary"),
            vmem_limit_bytes=vmem_limit),
        cost_estimate=pl.CostEstimate(
            flops=2 * m_pad * rows * tail, transcendentals=0,
            bytes_accessed=(m_pad // block_rows) * rows * tail * itemsize
                           + m * tail * itemsize),
    )(idx2d, data2d)


# ---------------------------------------------------------------------------
# Public wrapper: GatherNd forward (matches aimet_torch.elementwise_ops.GatherNd)
# ---------------------------------------------------------------------------
def gather_nd(data: jax.Array, indices: jax.Array, batch_dims: int) -> jax.Array:
    data_shape = tuple(data.shape)
    idx_shape = tuple(indices.shape)
    data_rank = len(data_shape)
    k = idx_shape[-1]
    assert 1 <= k <= data_rank - batch_dims
    assert data_shape[:batch_dims] == idx_shape[:batch_dims]

    batch_dims_shape = list(idx_shape[:batch_dims])
    batch_size = int(np.prod(batch_dims_shape)) if batch_dims_shape else 1
    gather_dims = data_shape[batch_dims:batch_dims + k]       # indexed dims
    tail_shape = data_shape[batch_dims + k:]                  # trailing slice dims
    rows_per_batch = int(np.prod(gather_dims))
    tail = int(np.prod(tail_shape)) if tail_shape else 1
    outer_shape = list(idx_shape[batch_dims:-1])
    n_outer = int(np.prod(outer_shape)) if outer_shape else 1
    m = batch_size * n_outer
    output_shape = batch_dims_shape + outer_shape + list(tail_shape)

    rows = batch_size * rows_per_batch
    itemsize = np.dtype(data.dtype).itemsize

    # ---- glue (plain JAX): flat row indices ----
    data2d = data.reshape(rows, tail)
    idx = indices.reshape(batch_size, n_outer, k).astype(jnp.int32)
    gdims = jnp.asarray(gather_dims, dtype=jnp.int32)
    idx = jnp.where(idx < 0, idx + gdims, idx)                # ONNX negative indices
    strides = jnp.asarray(pl.strides_from_shape(gather_dims), dtype=jnp.int32)
    flat = jnp.sum(idx * strides, axis=-1)                    # (B, N)
    flat = flat + jnp.arange(batch_size, dtype=jnp.int32)[:, None] * rows_per_batch
    flat = flat.reshape(m)
    flat = jnp.clip(flat, 0, rows - 1)                        # OOB DMA = hard fault

    # ---- wrapper-side tail split for huge rows (keeps blocks inside v7x VMEM) ----
    row_bytes = tail * itemsize
    split = _split_tail(tail, itemsize)
    if split > 1:
        sub = tail // split
        data2d = data2d.reshape(rows * split, sub)
        flat = (flat[:, None] * split
                + jnp.arange(split, dtype=jnp.int32)).reshape(-1)
        rows, tail, m = rows * split, sub, m * split
        row_bytes = tail * itemsize

    # ---- path dispatch ----
    mxu_eligible = data.dtype in (jnp.float32, jnp.bfloat16, jnp.float16)
    br_mxu = _pick_block_rows(m, row_bytes, _MXU_OUT_BLOCK_BYTES,
                              _MXU_MAX_BLOCK_ROWS)
    table_bytes = rows * tail * itemsize
    use_mxu = (mxu_eligible
               and row_bytes <= _mxu_row_bytes_threshold()
               and table_bytes <= br_mxu * _DESC_EQUIV_BYTES)

    if use_mxu:
        out2d = _gather_rows_mxu(data2d, flat, m, br_mxu)
    else:
        br = _pick_block_rows(m, row_bytes, _TARGET_BLOCK_BYTES, _MAX_BLOCK_ROWS)
        out2d = _gather_rows_dma(data2d, flat, m, br)
    return out2d.reshape(output_shape)


# ---------------------------------------------------------------------------
# Pure-numpy reference (verification only)
# ---------------------------------------------------------------------------
def _reference_gather_nd(data, indices, batch_dims):
    data_shape = tuple(data.shape)
    idx_shape = tuple(indices.shape)
    k = idx_shape[-1]
    batch_dims_shape = list(idx_shape[:batch_dims])
    batch_size = int(np.prod(batch_dims_shape)) if batch_dims_shape else 1
    tail_shape = data_shape[batch_dims + k:]
    outer_shape = list(idx_shape[batch_dims:-1])
    n_outer = int(np.prod(outer_shape)) if outer_shape else 1

    rdata = data.reshape((batch_size,) + data_shape[batch_dims:])
    ridx = indices.reshape(batch_size, n_outer, k)
    out = []
    for b in range(batch_size):
        for o in range(n_outer):
            g = tuple(int(x) for x in np.asarray(ridx[b, o]))
            out.append(np.asarray(rdata[(b,) + g]))
    out = np.stack(out, axis=0)
    return out.reshape(batch_dims_shape + outer_shape + list(tail_shape))


if __name__ == "__main__":
    key = jax.random.PRNGKey(0)
    k_d1, k_i0, k_i1, k_d2, k_i2, k_d3, k_i3 = jax.random.split(key, 7)

    # Case 1 (one-hot MXU path): batch_dims=1, k=2, f32, tail=128.
    # data: (2, 6, 5, 128); indices: (2, 4, 2) -> out: (2, 4, 128)
    data1 = jax.random.normal(k_d1, (2, 6, 5, 128), dtype=jnp.float32)
    i0 = jax.random.randint(k_i0, (2, 4, 1), 0, 6, dtype=jnp.int32)
    i1 = jax.random.randint(k_i1, (2, 4, 1), 0, 5, dtype=jnp.int32)
    idx1 = jnp.concatenate([i0, i1], axis=-1)
    out1 = jax.block_until_ready(gather_nd(data1, idx1, 1))
    ref1 = _reference_gather_nd(np.asarray(data1), np.asarray(idx1), 1)
    assert out1.shape == ref1.shape, (out1.shape, ref1.shape)
    np.testing.assert_allclose(np.asarray(out1), ref1, rtol=0, atol=0)

    # Case 2 (row-DMA path; clipped partial last block; negative index).
    # data: (16, 4, 128); indices: (10, 1) -> out: (10, 4, 128)
    data2 = jax.random.normal(k_d2, (16, 4, 128), dtype=jnp.float32)
    idx2 = jax.random.randint(k_i2, (10, 1), 0, 16, dtype=jnp.int32)
    idx2 = idx2.at[3, 0].set(-2)   # ONNX GatherND allows negative indices
    out2 = jax.block_until_ready(gather_nd(data2, idx2, 0))
    ref2 = _reference_gather_nd(np.asarray(data2), np.asarray(idx2), 0)
    assert out2.shape == ref2.shape, (out2.shape, ref2.shape)
    np.testing.assert_allclose(np.asarray(out2), ref2, rtol=0, atol=0)

    # Case 3 (row-DMA path; int dtype; full-dim block with m=5 not a multiple of 8).
    # data: (12, 128) int32; indices: (5, 1) -> out: (5, 128)
    data3 = jax.random.randint(k_d3, (12, 128), 0, 1000, dtype=jnp.int32)
    idx3 = jax.random.randint(k_i3, (5, 1), 0, 12, dtype=jnp.int32)
    out3 = jax.block_until_ready(gather_nd(data3, idx3, 0))
    ref3 = _reference_gather_nd(np.asarray(data3), np.asarray(idx3), 0)
    assert out3.shape == ref3.shape, (out3.shape, ref3.shape)
    np.testing.assert_allclose(np.asarray(out3), ref3, rtol=0, atol=0)

    print("KERNEL_OK")
</pallas_src>

<mosaic_0001>
module attributes {stable_mosaic.version = 11 : i64} {
  func.func @kernel(%arg0: i32, %arg1: i32, %arg2: memref<8x1xi32, #tpu.memory_space<vmem>>, %arg3: memref<60x128xf32, #tpu.memory_space<vmem>>, %arg4: memref<8x128xf32, #tpu.memory_space<vmem>>, %arg5: memref<8x128xf32, #tpu.memory_space<vmem>>) attributes {dimension_semantics = [#tpu.dimension_semantics<parallel>, #tpu.dimension_semantics<arbitrary>], iteration_bounds = array<i64: 1, 1>, scalar_prefetch = 0 : i64, scratch_operands = 1 : i64, tpu.core_type = #tpu.core_type<tc>, window_params = [{transform_indices = @transform_0, window_bounds = array<i64: 8, 1>}, {transform_indices = @transform_1, window_bounds = array<i64: 60, 128>}, {transform_indices = @transform_2, window_bounds = array<i64: 8, 128>}]} {
    %c0_i32 = arith.constant 0 : i32
    %0 = arith.cmpi eq, %arg1, %c0_i32 : i32
    %1 = arith.extui %0 : i1 to i32
    %c0_i32_0 = arith.constant 0 : i32
    %2 = arith.cmpi ne, %1, %c0_i32_0 : i32
    scf.if %2 {
      %cst_12 = arith.constant 0.000000e+00 : f32
      %31 = vector.broadcast %cst_12 : f32 to vector<8x128xf32>
      %c0_13 = arith.constant 0 : index
      %c0_14 = arith.constant 0 : index
      %32 = vector.load %arg5[%c0_13, %c0_14] : memref<8x128xf32, #tpu.memory_space<vmem>>, vector<8x128xf32>
      tpu.vector_store %arg5[%c0_13, %c0_14], %31 {strides = array<i32>} : memref<8x128xf32, #tpu.memory_space<vmem>>, vector<8x128xf32>,
    } else {
    }
    %c60_i32 = arith.constant 60 : i32
    %3 = arith.muli %arg1, %c60_i32 : i32
    %4 = tpu.iota {dimensions = array<i32: 0>} : vector<60x1xi32>
    %5 = vector.broadcast %3 : i32 to vector<60x1xi32>
    %6 = arith.addi %5, %4 : vector<60x1xi32>
    %c60_i32_1 = arith.constant 60 : i32
    %7 = vector.broadcast %c60_i32_1 : i32 to vector<60x1xi32>
    %8 = arith.cmpi slt, %6, %7 : vector<60x1xi32>
    %c0 = arith.constant 0 : index
    %c0_2 = arith.constant 0 : index
    %9 = vector.load %arg3[%c0, %c0_2] : memref<60x128xf32, #tpu.memory_space<vmem>>, vector<60x128xf32>
    %c0_i32_3 = arith.constant 0 : i32
    %10 = arith.sitofp %c0_i32_3 : i32 to f32
    %11 = vector.shape_cast %8 : vector<60x1xi1> to vector<60x1xi1>
    %12 = vector.broadcast %11 : vector<60x1xi1> to vector<60x128xi1>
    %13 = vector.broadcast %10 : f32 to vector<60x128xf32>
    %14 = arith.select %12, %9, %13 : vector<60x128xi1>, vector<60x128xf32>
    %15 = tpu.iota {dimensions = array<i32: 1>} : vector<1x60xi32>
    %16 = vector.broadcast %3 : i32 to vector<1x60xi32>
    %17 = arith.addi %16, %15 : vector<1x60xi32>
    %c0_4 = arith.constant 0 : index
    %c0_5 = arith.constant 0 : index
    %18 = vector.load %arg2[%c0_4, %c0_5] : memref<8x1xi32, #tpu.memory_space<vmem>>, vector<8x1xi32>
    %19 = vector.broadcast %18 : vector<8x1xi32> to vector<8x60xi32>
    %20 = vector.broadcast %17 : vector<1x60xi32> to vector<8x60xi32>
    %21 = arith.cmpi eq, %19, %20 : vector<8x60xi32>
    %22 = arith.extui %21 : vector<8x60xi1> to vector<8x60xi32>
    %23 = arith.sitofp %22 : vector<8x60xi32> to vector<8x60xf32>
    %c0_6 = arith.constant 0 : index
    %c0_7 = arith.constant 0 : index
    %24 = vector.load %arg5[%c0_6, %c0_7] : memref<8x128xf32, #tpu.memory_space<vmem>>, vector<8x128xf32>
    %cst = arith.constant dense<0.000000e+00> : vector<8x128xf32>
    %25 = tpu.matmul %23, %14, %cst {dimension_numbers = #tpu.dot_dimension_numbers<[1], [0], [0], [1], [0, 0, 1, 1], [], []>} : vector<8x60xf32>, vector<60x128xf32>, vector<8x128xf32> -> vector<8x128xf32>
    %26 = arith.addf %24, %25 : vector<8x128xf32>
    %c0_8 = arith.constant 0 : index
    %c0_9 = arith.constant 0 : index
    %27 = vector.load %arg5[%c0_8, %c0_9] : memref<8x128xf32, #tpu.memory_space<vmem>>, vector<8x128xf32>
    tpu.vector_store %arg5[%c0_8, %c0_9], %26 {strides = array<i32>} : memref<8x128xf32, #tpu.memory_space<vmem>>, vector<8x128xf32>,
    %c0_i32_10 = arith.constant 0 : i32
    %28 = arith.cmpi eq, %arg1, %c0_i32_10 : i32
    %29 = arith.extui %28 : i1 to i32
    %c0_i32_11 = arith.constant 0 : i32
    %30 = arith.cmpi ne, %29, %c0_i32_11 : i32
    scf.if %30 {
      %c0_12 = arith.constant 0 : index
      %c0_13 = arith.constant 0 : index
      %31 = vector.load %arg5[%c0_12, %c0_13] : memref<8x128xf32, #tpu.memory_space<vmem>>, vector<8x128xf32>
      %c0_14 = arith.constant 0 : index
      %c0_15 = arith.constant 0 : index
      %32 = vector.load %arg4[%c0_14, %c0_15] : memref<8x128xf32, #tpu.memory_space<vmem>>, vector<8x128xf32>
      tpu.vector_store %arg4[%c0_14, %c0_15], %31 {strides = array<i32>} : memref<8x128xf32, #tpu.memory_space<vmem>>, vector<8x128xf32>,
    } else {
    }
    return
  }
  func.func @transform_0(%arg0: i32, %arg1: i32) -> (i32, i32) {
    %c0_i32 = arith.constant 0 : i32
    %c0_i32_0 = arith.constant 0 : i32
    return %arg0, %c0_i32 : i32, i32
  }
  func.func @transform_1(%arg0: i32, %arg1: i32) -> (i32, i32) {
    %c0_i32 = arith.constant 0 : i32
    %c0_i32_0 = arith.constant 0 : i32
    return %arg1, %c0_i32 : i32, i32
  }
  func.func @transform_2(%arg0: i32, %arg1: i32) -> (i32, i32) {
    %c0_i32 = arith.constant 0 : i32
    %c0_i32_0 = arith.constant 0 : i32
    return %arg0, %c0_i32 : i32, i32
  }
}

</mosaic_0001>

<bundles_post_ra>
// kernel: tpu_custom_call.1
= control target key start
LH: loop header
LB: loop body
LE: loop exit
PB: predicated region body
PF: predicated region fallthrough
CT: control target
= control target key end

     0   :  { %7 = vsyncpa [#allocation4], 0  ;;  %s354_s0 = inlined_call_operand.vmem [shape: s32[8,1], index: 0, kind: input, shape index: {}]   ;;  %s355_s1 = inlined_call_operand.hbm [shape: f32[60,128], index: 1, kind: input, shape index: {}]   ;;  %s356_s2 = inlined_call_operand.hbm [shape: f32[8,128], index: 2, kind: output, shape index: {}]  }
   0x1   :  { %8 = vsyncpa [#allocation5], 0  ;;  %s303_s9 = smov [#allocation3]   ;;  %s255_s13 = scalar_lea.hbm %s355_s1, 1024 }
   0x2   :  { %s16_s10 = sshll.u32 %s303_s9, 4  ;;  %p256_p0 = scmp.ne.s32.totalorder %s355_s1, %s255_s13  ;;  %s17_s10 = int_to_ptr.vmem [resolvable:$true] %s16_s10 }
   0x3   :  { %p259_p1 = scmp.lt.u32.totalorder %s255_s13, %s355_s1 }
   0x5   :  { %p261_p2 = pnand %p259_p1, %p256_p0 }
   0x7   :  { %264 = shalt.err (!%p261_p2)
}
   0x8   :  { %s265_s18 = scalar_lea.vmem %s17_s10, 1024  ;;  %p270_p4 = scmp.lt.s32.totalorder %s17_s10, %s17_s10 }
   0x9   :  { %p266_p3 = scmp.ne.s32.totalorder %s17_s10, %s265_s18  ;;  %p271_p5 = scmp.lt.s32.totalorder %s265_s18, %s265_s18 }
   0xb   :  { %p272_p6 = por %p271_p5, %p270_p4 }
   0xd   :  { %p273_p7 = pnand %p272_p6, %p266_p3 }
   0xf   :  { %276 = shalt.err (!%p273_p7)
}
  0x10   :  { %s304_s19 = smov 128   ;;  %s305_s20 = smov 8  }
  0x11   :  { %22 = dma.hbm_to_vmem [thread:$0]  %s355_s1, 1024, %s17_s10, [#allocation4], %s304_s19, %s304_s19, %s305_s20  }
  0x12   :  { %299 = dma.done.wait [#allocation4], 1024  }
  0x13   :  { %300 = vsyncadd [#allocation4], 4294966272  ;;  %v32_v0 = vlaneseq  ;;  %v306_v1 = vmov 0   ;;  %v307_v2 = vmov 0.0|0.0   ;;  %v93_v4 = vld [vmem:[%s354_s0] sm:$0xff]  ;;  %v59_v6 = vld [vmem:[#allocation3 + $0x8] sm:$0xff] }
  0x14   :  { %254 = vset.pattern.permute.xlu0 %v306_v1  ;;  %232 = vmatprep.subr.bf16.mxu0 %v307_v2  ;;  %v58_v5 = vld [vmem:[#allocation3] sm:$0xff]  ;;  %v60_v8 = vld [vmem:[#allocation3 + $0x10] sm:$0xff]  ;;  %v61_v9 = vld [vmem:[#allocation3 + $0x18] sm:$0xff]  ;;  %vm308_vm0 = vmmov 0   ;;  %v309_v11 = vmov 0.0   ;;  %vm105_vm2 = vcmask 1043456  }
  0x15   :  { %v33_v3 = vshrl.u32 %v32_v0, 7  ;;  %95 = vperm.xlu0 %254, %v93_v4   ;;  %v233_v7 = vpack.c.bf16 %v59_v6, %v58_v5  ;;  %229 = vmatprep.mubr.msk.f32.mxu0 %vm308_vm0, %v309_v11  ;;  %v236_v12 = vpack.c.bf16 %v61_v9, %v60_v8  ;;  %v62_v13 = vld [vmem:[#allocation3 + $0x20] sm:$0xff]  ;;  %v63_v14 = vld [vmem:[#allocation3 + $0x28] sm:$0xff]  ;;  %v65_v15 = vld [vmem:[#allocation3 + $0x38] sm:$0xf]  ;;  %vm310_vm3 = vmmov 1  }
  0x16   :  { %v239_v16 = vpack.c.bf16 %v63_v14, %v62_v13  ;;  %v64_v17 = vld [vmem:[#allocation3 + $0x30] sm:$0xff]  ;;  %vm243_vm4 = vmpackc.low %vm105_vm2, %vm310_vm3  ;;  %v91_v20 = vand.u32 127, %v32_v0  ;;  %vm101_vm5 = vcmask 490496   ;;  %s311_s0 = smov [#allocation6]  }
  0x17   :  { %v40_v10 = vadd.s32 56, %v33_v3  ;;  %234 = vmatpush3.bf16.msra.mxu0 %v233_v7  ;;  %s192_s1 = sshll.u32 %s311_s0, 4  ;;  %s193_s1 = int_to_ptr.vmem [resolvable:$true] %s192_s1 }
  0x18   :  { %235 = vmatprep.subr.bf16.mxu0 %v307_v2  ;;  %s277_s25 = scalar_lea.vmem %s193_s1, 128  ;;  %p282_p9 = scmp.lt.s32.totalorder %s193_s1, %s193_s1 }
  0x19   :  { %vm57_vm1 = vcmp.lt.s32.totalorder %v40_v10, 60  ;;  %p278_p8 = scmp.ne.s32.totalorder %s193_s1, %s277_s25  ;;  %p283_p10 = scmp.lt.s32.totalorder %s277_s25, %s277_s25 }
  0x1a   :  { %v89_v18 = vsel %vm57_vm1, %v65_v15, 0.0 }
  0x1b   :  { %237 = vmatpush3.bf16.msra.mxu0 %v236_v12  ;;  %v242_v19 = vpack.c.bf16 %v89_v18, %v64_v17  ;;  %p284_p11 = por %p283_p10, %p282_p9 }
  0x1c   :  { %238 = vmatprep.subr.bf16.mxu0 %v307_v2 }
  0x1d   :  { %p285_p12 = pnand %p284_p11, %p278_p8 }
  0x1f   :  { %240 = vmatpush3.bf16.msra.mxu0 %v239_v16 }
  0x20   :  { %241 = vmatprep.subr.bf16.mxu0 %v307_v2 }
  0x23   :  { %244 = vmatpush3.bf16.msk.msra.mxu0 %vm243_vm4, %v242_v19 }
  0x94   :  { %v96_v21 = vpop.permute.xlu0 %95 }
  0x95   :  { %vm97_vm6 = vcmp.eq.s32.totalorder %v96_v21, %v91_v20 }
  0x96   :  { %v201_v22 = vsel %vm97_vm6, 1.0, %v309_v11 }
  0x97   :  { %230 = vmatmul.mubr.msk.f32.vlgmr.msra.gmra.mrb[0].mxu0 %vm101_vm5, %v201_v22 }
 0x16a   :  { %v175_v23 = vpop.f32.mrb[0].mxu0 }
 0x16b   :  { %185 = vst [vmem:[#allocation6] sm:$0xff] %v175_v23  ;;  %v231_v24 = vpop.f32.mrb[1].mxu0 }
 0x16c   :  { %288 = shalt.err (!%p285_p12)
}
 0x16d   :  { %s289_s28 = scalar_lea.hbm %s356_s2, 128 }
 0x16e   :  { %p290_p13 = scmp.ne.s32.totalorder %s356_s2, %s289_s28  ;;  %p293_p0 = scmp.lt.u32.totalorder %s289_s28, %s356_s2 }
 0x170   :  { %p295_p1 = pnand %p293_p0, %p290_p13 }
 0x172   :  { %298 = shalt.err (!%p295_p1)
}
 0x173   :  { %195 = dma.vmem_to_hbm [thread:$0]  %s193_s1, 128, %s356_s2, [#allocation5]  }
 0x174   :  { %301 = dma.done.wait [#allocation5], 128  }
 0x175   :  { %302 = vsyncadd [#allocation5], 4294967168 }
 0x176   :  { %199 = vsyncpa [#allocation4], 1 }
 0x177   :  { %200 = vsyncpa [#allocation5], 1 }

</bundles_post_ra>
